<compile_context>
chip_gen: v6e
topology: v6e:2x2x1
jax: 0.10.0
libtpu: 0.0.40
codegen_flags: <defaults>
</compile_context>

<pallas_src>
import jax
import jax.numpy as jnp
from jax.experimental import pallas as pl
from jax.experimental.pallas import tpu as pltpu

Z_DIM = 8  # HP['Z_dim']
_SIZES = [(Z_DIM, 10), (10, 30), (30, 30), (30, 4), (4, Z_DIM)]  # (fan_in, fan_out)

# VMEM budget for the double-buffered x + out blocks (2 arrays x 2 buffers).
_TB_VMEM_BYTES = 32 * 1024 * 1024
_TB_VMEM_CAP = (_TB_VMEM_BYTES // (4 * Z_DIM * 4)) // 128 * 128  # batch elems


def t_forward_kernel(x_ref,
                     w1_ref, b1_ref,
                     w2_ref, b2_ref,
                     w3_ref, b3_ref,
                     w4_ref, b4_ref,
                     w5_ref, b5_ref,
                     out_ref):
    """Fused 5-layer MLP (relu x3, tanh, residual) in [features, batch] layout."""
    x_in = x_ref[...]                                                   # (Z, TB)

    h = jnp.dot(w1_ref[...], x_in, preferred_element_type=jnp.float32) + b1_ref[...]
    h = jnp.maximum(h, 0.0)

    h = jnp.dot(w2_ref[...], h, preferred_element_type=jnp.float32) + b2_ref[...]
    h = jnp.maximum(h, 0.0)

    h = jnp.dot(w3_ref[...], h, preferred_element_type=jnp.float32) + b3_ref[...]
    h = jnp.maximum(h, 0.0)

    h = jnp.dot(w4_ref[...], h, preferred_element_type=jnp.float32) + b4_ref[...]
    h = jnp.tanh(h)

    h = jnp.dot(w5_ref[...], h, preferred_element_type=jnp.float32) + b5_ref[...]
    out_ref[...] = h + x_in


def _round_up(n, m):
    return ((n + m - 1) // m) * m


def _pick_tile_b(batch, tile_b, min_grid=2):
    """Lane-aligned batch tile.

    - batch <= 128: use the full extent (block == full array dim, always legal).
    - otherwise: force a multiple of 128 (regardless of user tile_b), keep the
      grid at >= `min_grid` steps (so v7x's 2 TensorCores both get work), and
      cap the per-block VMEM footprint.
    """
    if batch <= 128:
        return batch
    tb = _round_up(max(128, min(int(tile_b), batch)), 128)
    grid_cap = max(128, _round_up(pl.cdiv(batch, max(1, min_grid)), 128))
    return max(128, min(tb, grid_cap, _TB_VMEM_CAP))


def t_forward_fm(x_fm, params, *, tile_b=131072, min_grid=2):
    """Feature-major entry point (preferred): x_fm is (Z_DIM, B) -> (Z_DIM, B).

    No layout changes are materialized around the kernel; batch sits on the
    128-lane axis both in HBM and in VMEM.
    """
    assert x_fm.shape[0] == Z_DIM, f"expected ({Z_DIM}, B), got {x_fm.shape}"
    batch = x_fm.shape[1]
    tb = _pick_tile_b(batch, tile_b, min_grid)
    grid = (pl.cdiv(batch, tb),)

    args = [x_fm]
    in_specs = [pl.BlockSpec((Z_DIM, tb), lambda i: (0, i))]
    weight_bytes = 0
    for li in range(1, 6):
        w, b = params[f"fc{li}"]
        args += [w, b]
        # Full-array blocks with constant index_maps: DMA'd once, VMEM-resident
        # across every batch tile.
        in_specs += [pl.BlockSpec(w.shape, lambda i: (0, 0)),
                     pl.BlockSpec(b.shape, lambda i: (0, 0))]
        weight_bytes += w.size * w.dtype.itemsize + b.size * b.dtype.itemsize

    flops = 2 * batch * sum(fi * fo for fi, fo in _SIZES)
    cost = pl.CostEstimate(
        flops=flops,
        transcendentals=batch * _SIZES[3][1],              # tanh on the width-4 layer
        bytes_accessed=2 * batch * Z_DIM * 4 + weight_bytes)

    # Explicit scoped-VMEM limit sized to the chosen tile (double-buffered x+out
    # plus weights and slack), capped well below v7x's 64 MiB physical VMEM.
    block_bytes = tb * Z_DIM * 4
    vmem_limit = min(max(32 * 1024 * 1024, 4 * block_bytes + (2 << 20)),
                     48 * 1024 * 1024)

    return pl.pallas_call(
        t_forward_kernel,
        out_shape=jax.ShapeDtypeStruct((Z_DIM, batch), jnp.float32),
        grid=grid,
        in_specs=in_specs,
        out_specs=pl.BlockSpec((Z_DIM, tb), lambda i: (0, i)),
        compiler_params=pltpu.CompilerParams(
            dimension_semantics=("parallel",),
            vmem_limit_bytes=vmem_limit),
        cost_estimate=cost,
    )(*args)


def t_forward(x, params, *, tile_b=131072, min_grid=2):
    """Torch-layout compat wrapper: x (..., Z_DIM) -> (B, Z_DIM).

    NOTE: the two .T below are materialized HBM layout changes; keep
    activations feature-major and call t_forward_fm directly in real use.
    """
    x2 = x.reshape(-1, Z_DIM)
    return t_forward_fm(x2.T, params, tile_b=tile_b, min_grid=min_grid).T


def init_params(key):
    """Deterministic init mimicking nn.Linear's uniform(-1/sqrt(fan_in), ...).

    Weights stored as [out, in] (torch layout), biases as [out, 1].
    """
    params = {}
    for i, (fan_in, fan_out) in enumerate(_SIZES, start=1):
        key, kw, kb = jax.random.split(key, 3)
        bound = 1.0 / jnp.sqrt(float(fan_in))
        w = jax.random.uniform(kw, (fan_out, fan_in), jnp.float32, -bound, bound)
        b = jax.random.uniform(kb, (fan_out, 1), jnp.float32, -bound, bound)
        params[f"fc{i}"] = (w, b)
    return params


def t_forward_ref(x, params):
    """Pure-JAX reference (standard [batch, features] math) for correctness."""
    x2 = x.reshape(-1, Z_DIM)
    acts = (jax.nn.relu, jax.nn.relu, jax.nn.relu, jnp.tanh, None)
    h = x2
    for i, act in enumerate(acts, start=1):
        w, b = params[f"fc{i}"]
        h = h @ w.T + b[:, 0]
        if act is not None:
            h = act(h)
    return h + x2


if __name__ == "__main__":
    key = jax.random.PRNGKey(0)
    key, kx = jax.random.split(key)
    params = init_params(key)

    # 1) Primary: small batch through the feature-major (no-transpose) API.
    batch = 2
    x_fm = jax.random.normal(kx, (Z_DIM, batch), jnp.float32)
    out_fm = jax.block_until_ready(t_forward_fm(x_fm, params))
    ref = t_forward_ref(x_fm.T, params)
    assert out_fm.shape == (Z_DIM, batch)
    assert jnp.allclose(out_fm.T, ref, atol=1e-5, rtol=1e-5), "mismatch (small batch, fm)"

    # 2) Multi-tile lane-aligned grid path (feature-major, 4 grid steps).
    x_fm2 = jax.random.normal(jax.random.PRNGKey(1), (Z_DIM, 512), jnp.float32)
    out_fm2 = jax.block_until_ready(t_forward_fm(x_fm2, params, tile_b=128))
    ref2 = t_forward_ref(x_fm2.T, params)
    assert out_fm2.shape == (Z_DIM, 512)
    assert jnp.allclose(out_fm2.T, ref2, atol=1e-5, rtol=1e-5), "mismatch (tiled, fm)"

    # 3) Torch-layout compat wrapper; ragged edge tile + non-128 user tile_b
    #    (gets rounded/capped: tb -> 256, grid -> 2 with a partial edge tile).
    xb = jax.random.normal(jax.random.PRNGKey(2), (300, Z_DIM), jnp.float32)
    outb = jax.block_until_ready(t_forward(xb, params, tile_b=1000))
    refb = t_forward_ref(xb, params)
    assert outb.shape == (300, Z_DIM)
    assert jnp.allclose(outb, refb, atol=1e-5, rtol=1e-5), "mismatch (compat wrapper)"

    print("KERNEL_OK")
</pallas_src>

<mosaic_0001>
module attributes {stable_mosaic.version = 11 : i64} {
  func.func @t_forward_kernel(%arg0: i32, %arg1: memref<8x2xf32, #tpu.memory_space<vmem>>, %arg2: memref<10x8xf32, #tpu.memory_space<vmem>>, %arg3: memref<10x1xf32, #tpu.memory_space<vmem>>, %arg4: memref<30x10xf32, #tpu.memory_space<vmem>>, %arg5: memref<30x1xf32, #tpu.memory_space<vmem>>, %arg6: memref<30x30xf32, #tpu.memory_space<vmem>>, %arg7: memref<30x1xf32, #tpu.memory_space<vmem>>, %arg8: memref<4x30xf32, #tpu.memory_space<vmem>>, %arg9: memref<4x1xf32, #tpu.memory_space<vmem>>, %arg10: memref<8x4xf32, #tpu.memory_space<vmem>>, %arg11: memref<8x1xf32, #tpu.memory_space<vmem>>, %arg12: memref<8x2xf32, #tpu.memory_space<vmem>>) attributes {dimension_semantics = [#tpu.dimension_semantics<parallel>], iteration_bounds = array<i64: 1>, scalar_prefetch = 0 : i64, scratch_operands = 0 : i64, tpu.core_type = #tpu.core_type<tc>, window_params = [{transform_indices = @transform_0, window_bounds = array<i64: 8, 2>}, {pipeline_mode = #tpu.pipeline_mode<synchronous>, transform_indices = @transform_1, window_bounds = array<i64: 10, 8>}, {pipeline_mode = #tpu.pipeline_mode<synchronous>, transform_indices = @transform_2, window_bounds = array<i64: 10, 1>}, {pipeline_mode = #tpu.pipeline_mode<synchronous>, transform_indices = @transform_3, window_bounds = array<i64: 30, 10>}, {pipeline_mode = #tpu.pipeline_mode<synchronous>, transform_indices = @transform_4, window_bounds = array<i64: 30, 1>}, {pipeline_mode = #tpu.pipeline_mode<synchronous>, transform_indices = @transform_5, window_bounds = array<i64: 30, 30>}, {pipeline_mode = #tpu.pipeline_mode<synchronous>, transform_indices = @transform_6, window_bounds = array<i64: 30, 1>}, {pipeline_mode = #tpu.pipeline_mode<synchronous>, transform_indices = @transform_7, window_bounds = array<i64: 4, 30>}, {pipeline_mode = #tpu.pipeline_mode<synchronous>, transform_indices = @transform_8, window_bounds = array<i64: 4, 1>}, {pipeline_mode = #tpu.pipeline_mode<synchronous>, transform_indices = @transform_9, window_bounds = array<i64: 8, 4>}, {pipeline_mode = #tpu.pipeline_mode<synchronous>, transform_indices = @transform_10, window_bounds = array<i64: 8, 1>}, {transform_indices = @transform_11, window_bounds = array<i64: 8, 2>}]} {
    %c0 = arith.constant 0 : index
    %c0_0 = arith.constant 0 : index
    %0 = vector.load %arg1[%c0, %c0_0] : memref<8x2xf32, #tpu.memory_space<vmem>>, vector<8x2xf32>
    %c0_1 = arith.constant 0 : index
    %c0_2 = arith.constant 0 : index
    %1 = vector.load %arg2[%c0_1, %c0_2] : memref<10x8xf32, #tpu.memory_space<vmem>>, vector<10x8xf32>
    %cst = arith.constant dense<0.000000e+00> : vector<10x2xf32>
    %2 = tpu.matmul %1, %0, %cst {dimension_numbers = #tpu.dot_dimension_numbers<[1], [0], [0], [1], [0, 0, 1, 1], [], []>} : vector<10x8xf32>, vector<8x2xf32>, vector<10x2xf32> -> vector<10x2xf32>
    %c0_3 = arith.constant 0 : index
    %c0_4 = arith.constant 0 : index
    %3 = vector.load %arg3[%c0_3, %c0_4] : memref<10x1xf32, #tpu.memory_space<vmem>>, vector<10x1xf32>
    %4 = vector.broadcast %3 : vector<10x1xf32> to vector<10x2xf32>
    %5 = arith.addf %2, %4 : vector<10x2xf32>
    %cst_5 = arith.constant 0.000000e+00 : f32
    %6 = vector.broadcast %cst_5 : f32 to vector<10x2xf32>
    %7 = arith.maximumf %5, %6 : vector<10x2xf32>
    %c0_6 = arith.constant 0 : index
    %c0_7 = arith.constant 0 : index
    %8 = vector.load %arg4[%c0_6, %c0_7] : memref<30x10xf32, #tpu.memory_space<vmem>>, vector<30x10xf32>
    %cst_8 = arith.constant dense<0.000000e+00> : vector<30x2xf32>
    %9 = tpu.matmul %8, %7, %cst_8 {dimension_numbers = #tpu.dot_dimension_numbers<[1], [0], [0], [1], [0, 0, 1, 1], [], []>} : vector<30x10xf32>, vector<10x2xf32>, vector<30x2xf32> -> vector<30x2xf32>
    %c0_9 = arith.constant 0 : index
    %c0_10 = arith.constant 0 : index
    %10 = vector.load %arg5[%c0_9, %c0_10] : memref<30x1xf32, #tpu.memory_space<vmem>>, vector<30x1xf32>
    %11 = vector.broadcast %10 : vector<30x1xf32> to vector<30x2xf32>
    %12 = arith.addf %9, %11 : vector<30x2xf32>
    %cst_11 = arith.constant 0.000000e+00 : f32
    %13 = vector.broadcast %cst_11 : f32 to vector<30x2xf32>
    %14 = arith.maximumf %12, %13 : vector<30x2xf32>
    %c0_12 = arith.constant 0 : index
    %c0_13 = arith.constant 0 : index
    %15 = vector.load %arg6[%c0_12, %c0_13] : memref<30x30xf32, #tpu.memory_space<vmem>>, vector<30x30xf32>
    %cst_14 = arith.constant dense<0.000000e+00> : vector<30x2xf32>
    %16 = tpu.matmul %15, %14, %cst_14 {dimension_numbers = #tpu.dot_dimension_numbers<[1], [0], [0], [1], [0, 0, 1, 1], [], []>} : vector<30x30xf32>, vector<30x2xf32>, vector<30x2xf32> -> vector<30x2xf32>
    %c0_15 = arith.constant 0 : index
    %c0_16 = arith.constant 0 : index
    %17 = vector.load %arg7[%c0_15, %c0_16] : memref<30x1xf32, #tpu.memory_space<vmem>>, vector<30x1xf32>
    %18 = vector.broadcast %17 : vector<30x1xf32> to vector<30x2xf32>
    %19 = arith.addf %16, %18 : vector<30x2xf32>
    %cst_17 = arith.constant 0.000000e+00 : f32
    %20 = vector.broadcast %cst_17 : f32 to vector<30x2xf32>
    %21 = arith.maximumf %19, %20 : vector<30x2xf32>
    %c0_18 = arith.constant 0 : index
    %c0_19 = arith.constant 0 : index
    %22 = vector.load %arg8[%c0_18, %c0_19] : memref<4x30xf32, #tpu.memory_space<vmem>>, vector<4x30xf32>
    %cst_20 = arith.constant dense<0.000000e+00> : vector<4x2xf32>
    %23 = tpu.matmul %22, %21, %cst_20 {dimension_numbers = #tpu.dot_dimension_numbers<[1], [0], [0], [1], [0, 0, 1, 1], [], []>} : vector<4x30xf32>, vector<30x2xf32>, vector<4x2xf32> -> vector<4x2xf32>
    %c0_21 = arith.constant 0 : index
    %c0_22 = arith.constant 0 : index
    %24 = vector.load %arg9[%c0_21, %c0_22] : memref<4x1xf32, #tpu.memory_space<vmem>>, vector<4x1xf32>
    %25 = vector.broadcast %24 : vector<4x1xf32> to vector<4x2xf32>
    %26 = arith.addf %23, %25 : vector<4x2xf32>
    %27 = math.tanh %26 : vector<4x2xf32>
    %c0_23 = arith.constant 0 : index
    %c0_24 = arith.constant 0 : index
    %28 = vector.load %arg10[%c0_23, %c0_24] : memref<8x4xf32, #tpu.memory_space<vmem>>, vector<8x4xf32>
    %cst_25 = arith.constant dense<0.000000e+00> : vector<8x2xf32>
    %29 = tpu.matmul %28, %27, %cst_25 {dimension_numbers = #tpu.dot_dimension_numbers<[1], [0], [0], [1], [0, 0, 1, 1], [], []>} : vector<8x4xf32>, vector<4x2xf32>, vector<8x2xf32> -> vector<8x2xf32>
    %c0_26 = arith.constant 0 : index
    %c0_27 = arith.constant 0 : index
    %30 = vector.load %arg11[%c0_26, %c0_27] : memref<8x1xf32, #tpu.memory_space<vmem>>, vector<8x1xf32>
    %31 = vector.broadcast %30 : vector<8x1xf32> to vector<8x2xf32>
    %32 = arith.addf %29, %31 : vector<8x2xf32>
    %33 = arith.addf %32, %0 : vector<8x2xf32>
    %c0_28 = arith.constant 0 : index
    %c0_29 = arith.constant 0 : index
    %34 = vector.load %arg12[%c0_28, %c0_29] : memref<8x2xf32, #tpu.memory_space<vmem>>, vector<8x2xf32>
    tpu.vector_store %arg12[%c0_28, %c0_29], %33 {strides = array<i32>} : memref<8x2xf32, #tpu.memory_space<vmem>>, vector<8x2xf32>,
    return
  }
  func.func @transform_0(%arg0: i32) -> (i32, i32) {
    %c0_i32 = arith.constant 0 : i32
    %c0_i32_0 = arith.constant 0 : i32
    return %c0_i32, %arg0 : i32, i32
  }
  func.func @transform_1(%arg0: i32) -> (i32, i32) {
    %c0_i32 = arith.constant 0 : i32
    %c0_i32_0 = arith.constant 0 : i32
    %c0_i32_1 = arith.constant 0 : i32
    return %c0_i32, %c0_i32_0 : i32, i32
  }
  func.func @transform_2(%arg0: i32) -> (i32, i32) {
    %c0_i32 = arith.constant 0 : i32
    %c0_i32_0 = arith.constant 0 : i32
    %c0_i32_1 = arith.constant 0 : i32
    return %c0_i32, %c0_i32_0 : i32, i32
  }
  func.func @transform_3(%arg0: i32) -> (i32, i32) {
    %c0_i32 = arith.constant 0 : i32
    %c0_i32_0 = arith.constant 0 : i32
    %c0_i32_1 = arith.constant 0 : i32
    return %c0_i32, %c0_i32_0 : i32, i32
  }
  func.func @transform_4(%arg0: i32) -> (i32, i32) {
    %c0_i32 = arith.constant 0 : i32
    %c0_i32_0 = arith.constant 0 : i32
    %c0_i32_1 = arith.constant 0 : i32
    return %c0_i32, %c0_i32_0 : i32, i32
  }
  func.func @transform_5(%arg0: i32) -> (i32, i32) {
    %c0_i32 = arith.constant 0 : i32
    %c0_i32_0 = arith.constant 0 : i32
    %c0_i32_1 = arith.constant 0 : i32
    return %c0_i32, %c0_i32_0 : i32, i32
  }
  func.func @transform_6(%arg0: i32) -> (i32, i32) {
    %c0_i32 = arith.constant 0 : i32
    %c0_i32_0 = arith.constant 0 : i32
    %c0_i32_1 = arith.constant 0 : i32
    return %c0_i32, %c0_i32_0 : i32, i32
  }
  func.func @transform_7(%arg0: i32) -> (i32, i32) {
    %c0_i32 = arith.constant 0 : i32
    %c0_i32_0 = arith.constant 0 : i32
    %c0_i32_1 = arith.constant 0 : i32
    return %c0_i32, %c0_i32_0 : i32, i32
  }
  func.func @transform_8(%arg0: i32) -> (i32, i32) {
    %c0_i32 = arith.constant 0 : i32
    %c0_i32_0 = arith.constant 0 : i32
    %c0_i32_1 = arith.constant 0 : i32
    return %c0_i32, %c0_i32_0 : i32, i32
  }
  func.func @transform_9(%arg0: i32) -> (i32, i32) {
    %c0_i32 = arith.constant 0 : i32
    %c0_i32_0 = arith.constant 0 : i32
    %c0_i32_1 = arith.constant 0 : i32
    return %c0_i32, %c0_i32_0 : i32, i32
  }
  func.func @transform_10(%arg0: i32) -> (i32, i32) {
    %c0_i32 = arith.constant 0 : i32
    %c0_i32_0 = arith.constant 0 : i32
    %c0_i32_1 = arith.constant 0 : i32
    return %c0_i32, %c0_i32_0 : i32, i32
  }
  func.func @transform_11(%arg0: i32) -> (i32, i32) {
    %c0_i32 = arith.constant 0 : i32
    %c0_i32_0 = arith.constant 0 : i32
    return %c0_i32, %arg0 : i32, i32
  }
}

</mosaic_0001>

<bundles_post_ra>
// kernel: tpu_custom_call.1
= control target key start
LH: loop header
LB: loop body
LE: loop exit
PB: predicated region body
PF: predicated region fallthrough
CT: control target
= control target key end

     0   :  { %vm53_vm0 = vcmask 64512   ;;  %v673_v3 = vmov 0   ;;  %vm165_vm1 = vcmask 80896   ;;  %vm178_vm2 = vcmask 1041408   ;;  %s833_s0 = inlined_call_operand.vmem [shape: f32[8,2], index: 0, kind: input, shape index: {}]   ;;  %s834_s1 = inlined_call_operand.vmem [shape: f32[10,8], index: 1, kind: input, shape index: {}]   ;;  %s835_s2 = inlined_call_operand.vmem [shape: f32[10,1], index: 2, kind: input, shape index: {}]   ;;  %s836_s4 = inlined_call_operand.vmem [shape: f32[30,1], index: 4, kind: input, shape index: {}]   ;;  %s837_s6 = inlined_call_operand.vmem [shape: f32[30,1], index: 6, kind: input, shape index: {}]   ;;  %s838_s8 = inlined_call_operand.vmem [shape: f32[4,1], index: 8, kind: input, shape index: {}]   ;;  %s839_s3 = inlined_call_operand.vmem [shape: f32[30,10], index: 3, kind: input, shape index: {}]   ;;  %s840_s10 = inlined_call_operand.vmem [shape: f32[8,1], index: 10, kind: input, shape index: {}]   ;;  %s841_s5 = inlined_call_operand.vmem [shape: f32[30,30], index: 5, kind: input, shape index: {}]   ;;  %s842_s7 = inlined_call_operand.vmem [shape: f32[4,30], index: 7, kind: input, shape index: {}]   ;;  %s843_s9 = inlined_call_operand.vmem [shape: f32[8,4], index: 9, kind: input, shape index: {}]   ;;  %s844_s11 = inlined_call_operand.vmem [shape: f32[8,2], index: 11, kind: output, shape index: {}]  }
   0x1   :  { %v739_v0 = vld [vmem:[%s833_s0] sm:$0xff]  ;;  %v40_v2 = vld [vmem:[%s834_s1 + $0x8] sm:$0x3]  ;;  %669 = vset.pattern.permute.xlu0 %v673_v3  ;;  %670 = vset.pattern.permute.xlu1 %v673_v3  ;;  %v278_v7 = vld [vmem:[%s837_s6 + $0x18] sm:$0x3f]  ;;  %vm299_vm3 = vcmask 244736  }
   0x2   :  { %v39_v1 = vld [vmem:[%s834_s1] sm:$0xff]  ;;  %621 = vmatprep.subr.mxu0 %v739_v0  ;;  %v42_v4 = vld [vmem:[%s835_s2 + $0x8] sm:$0x3]  ;;  %v144_v11 = vld [vmem:[%s836_s4 + $0x18] sm:$0x3f]  ;;  %vm312_vm4 = vcmask 1045504  }
   0x3   :  { %623 = vmatprep.mubr.msk.f32.mxu0 %vm53_vm0, %v39_v1  ;;  %622 = vmatpush3.msra.mxu0 %v739_v0  ;;  %v41_v5 = vld [vmem:[%s835_s2] sm:$0xff]  ;;  %v142_v6 = vld [vmem:[%s836_s4 + $0x8] sm:$0xff]  ;;  %v143_v12 = vld [vmem:[%s836_s4 + $0x10] sm:$0xff]  ;;  %v674_v48 = vmov 0.0   ;;  %vm675_vm5 = vmmov 0   ;;  %vm500_vm6 = vcmask 1043456  }
   0x4   :  { %50 = vperm.xlu0 %669, %v42_v4   ;;  %624 = vmatmul.mubr.msk.f32.vlgmr.msra.gmra.mxu0 %vm53_vm0, %v40_v2  ;;  %v276_v8 = vld [vmem:[%s837_s6 + $0x8] sm:$0xff]  ;;  %v406_v9 = vld [vmem:[%s838_s8] sm:$0xf]  ;;  %v277_v14 = vld [vmem:[%s837_s6 + $0x10] sm:$0xff]  ;;  %vm496_vm7 = vcmask 31744   ;;  %vm575_vm8 = vcmask 15360  }
   0x5   :  { %v137_v10 = vld [vmem:[%s839_s3] sm:$0xff]  ;;  %162 = vperm.xlu1 %670, %v144_v11   ;;  %v138_v25 = vld [vmem:[%s839_s3 + $0x8] sm:$0xff]  ;;  %v139_v26 = vld [vmem:[%s839_s3 + $0x10] sm:$0xff] }
   0x6   :  { %630 = vmatprep.mubr.msk.f32.mxu1 %vm165_vm1, %v137_v10  ;;  %v141_v13 = vld [vmem:[%s836_s4] sm:$0xff]  ;;  %v140_v27 = vld [vmem:[%s839_s3 + $0x18] sm:$0x3f]  ;;  %v272_v45 = vld [vmem:[%s841_s5 + $0x8] sm:$0xff] }
   0x7   :  { %v275_v15 = vld [vmem:[%s837_s6] sm:$0xff]  ;;  %v273_v46 = vld [vmem:[%s841_s5 + $0x10] sm:$0xff]  ;;  %v274_v47 = vld [vmem:[%s841_s5 + $0x18] sm:$0x3f] }
   0x8   :  { %45 = vperm.xlu0 %669, %v41_v5   ;;  %v490_v16 = vld [vmem:[%s840_s10] sm:$0xff] }
   0x9   :  { %157 = vperm.xlu1 %670, %v143_v12   ;;  %v271_v28 = vld [vmem:[%s841_s5] sm:$0xff] }
   0xa   :  { %644 = vmatprep.mubr.msk.f32.mxu0 %vm299_vm3, %v271_v28  ;;  %v405_v2 = vld [vmem:[%s842_s7] sm:$0xf] }
   0xc   :  { %152 = vperm.xlu0 %669, %v142_v6  }
   0xd   :  { %147 = vperm.xlu1 %670, %v141_v13  }
  0x10   :  { %296 = vperm.xlu0 %669, %v278_v7   ;;  %v489_v7 = vld [vmem:[%s843_s9] sm:$0xff] }
  0x11   :  { %291 = vperm.xlu1 %670, %v277_v14  }
  0x14   :  { %286 = vperm.xlu0 %669, %v276_v8  }
  0x15   :  { %281 = vperm.xlu1 %670, %v275_v15  }
  0x18   :  { %409 = vperm.xlu0 %669, %v406_v9  }
  0x19   :  { %493 = vperm.xlu1 %670, %v490_v16  }
  0x7f   :  { %v51_v17 = vpop.permute.xlu0 %50 }
  0x80   :  { %v163_v29 = vpop.permute.xlu1 %162 }
  0x83   :  { %v46_v20 = vpop.permute.xlu0 %45 }
  0x84   :  { %v158_v31 = vpop.permute.xlu1 %157 }
  0x87   :  { %v153_v35 = vpop.permute.xlu0 %152 }
  0x88   :  { %v148_v40 = vpop.permute.xlu1 %147 }
  0x8b   :  { %v297_v49 = vpop.permute.xlu0 %296 }
  0x8c   :  { %v292_v51 = vpop.permute.xlu1 %291 }
  0x8f   :  { %v287_v55 = vpop.permute.xlu0 %286 }
  0x90   :  { %v282_v60 = vpop.permute.xlu1 %281 }
  0x93   :  { %v410_v3 = vpop.permute.xlu0 %409 }
  0x94   :  { %v494_v9 = vpop.permute.xlu1 %493 }
  0xc4   :  { %v625_v18 = vpop.f32.mrf.mxu0 }
  0xc5   :  { %v132_v19 = vadd.f32 %v625_v18, %v51_v17 }
  0xc6   :  { %v126_v21 = vpop.f32.mrf.mxu0 }
  0xc7   :  { %v136_v22 = vmax.f32 %v132_v19, 0.0  ;;  %v127_v23 = vadd.f32 %v126_v21, %v46_v20 }
  0xc9   :  { %v135_v24 = vmax.f32 %v127_v23, 0.0  ;;  %626 = vmatprep.subr.msk.mxu1 %vm178_vm2, %v136_v22 }
  0xca   :  { %627 = vmatpush3.msk.msra.mxu1 %vm178_vm2, %v136_v22 }
  0xcb   :  { %628 = vmatprep.subr.mxu1 %v135_v24 }
  0xcc   :  { %629 = vmatpush3.msra.mxu1 %v135_v24 }
  0xcd   :  { %631 = vmatmul.mubr.msk.f32.vlgmr.msra.gmra.mxu1 %vm165_vm1, %v138_v25  ;;  %650 = vmatprep.subr.mxu1 %v674_v48 }
  0xce   :  { %633 = vmatprep.mubr.msk.f32.mxu1 %vm165_vm1, %v139_v26 }
  0xd1   :  { %634 = vmatmul.mubr.msk.f32.gmra.mxu1 %vm165_vm1, %v140_v27 }
  0xd2   :  { %658 = vmatprep.mubr.msk.f32.mxu1 %vm675_vm5, %v674_v48 }
 0x18d   :  { %v632_v30 = vpop.f32.mrf.mxu1 }
 0x18e   :  { %v254_v37 = vadd.f32 %v632_v30, %v153_v35 }
 0x18f   :  { %v248_v32 = vpop.f32.mrf.mxu1 }
 0x190   :  { %v249_v41 = vadd.f32 %v248_v32, %v148_v40  ;;  %v268_v43 = vmax.f32 %v254_v37, 0.0 }
 0x191   :  { %v635_v33 = vpop.f32.mrf.mxu1 }
 0x192   :  { %v264_v34 = vadd.f32 %v635_v33, %v163_v29  ;;  %v267_v44 = vmax.f32 %v249_v41, 0.0 }
 0x193   :  { %v258_v36 = vpop.f32.mrf.mxu1 }
 0x194   :  { %v270_v38 = vmax.f32 %v264_v34, 0.0  ;;  %v259_v39 = vadd.f32 %v258_v36, %v158_v31 }
 0x196   :  { %v269_v42 = vmax.f32 %v259_v39, 0.0  ;;  %636 = vmatprep.subr.msk.mxu0 %vm312_vm4, %v270_v38 }
 0x197   :  { %637 = vmatpush3.msk.msra.mxu0 %vm312_vm4, %v270_v38 }
 0x198   :  { %638 = vmatprep.subr.mxu0 %v269_v42 }
 0x199   :  { %639 = vmatpush3.msra.mxu0 %v269_v42 }
 0x19a   :  { %640 = vmatprep.subr.mxu0 %v268_v43 }
 0x19b   :  { %641 = vmatpush3.msra.mxu0 %v268_v43 }
 0x19c   :  { %642 = vmatprep.subr.mxu0 %v267_v44 }
 0x19d   :  { %643 = vmatpush3.msra.mxu0 %v267_v44 }
 0x19e   :  { %645 = vmatmul.mubr.msk.f32.vlgmr.msra.gmra.mxu0 %vm299_vm3, %v272_v45 }
 0x19f   :  { %647 = vmatprep.mubr.msk.f32.mxu0 %vm299_vm3, %v273_v46 }
 0x1a2   :  { %648 = vmatmul.mubr.msk.f32.gmra.mxu0 %vm299_vm3, %v274_v47 }
 0x25e   :  { %v646_v50 = vpop.f32.mrf.mxu0 }
 0x25f   :  { %v388_v57 = vadd.f32 %v646_v50, %v287_v55 }
 0x260   :  { %v382_v52 = vpop.f32.mrf.mxu0 }
 0x261   :  { %v383_v61 = vadd.f32 %v382_v52, %v282_v60  ;;  %v402_v63 = vmax.f32 %v388_v57, 0.0 }
 0x262   :  { %v649_v53 = vpop.f32.mrf.mxu0 }
 0x263   :  { %v398_v54 = vadd.f32 %v649_v53, %v297_v49  ;;  %v401_v1 = vmax.f32 %v383_v61, 0.0 }
 0x264   :  { %v392_v56 = vpop.f32.mrf.mxu0 }
 0x265   :  { %v404_v58 = vmax.f32 %v398_v54, 0.0  ;;  %v393_v59 = vadd.f32 %v392_v56, %v292_v51 }
 0x267   :  { %v403_v62 = vmax.f32 %v393_v59, 0.0  ;;  %651 = vmatpush3.msk.msra.mxu1 %vm312_vm4, %v404_v58 }
 0x268   :  { %652 = vmatprep.subr.mxu1 %v674_v48 }
 0x269   :  { %653 = vmatpush3.msra.mxu1 %v403_v62 }
 0x26a   :  { %654 = vmatprep.subr.mxu1 %v674_v48 }
 0x26b   :  { %655 = vmatpush3.msra.mxu1 %v402_v63 }
 0x26c   :  { %656 = vmatprep.subr.mxu1 %v674_v48 }
 0x26d   :  { %657 = vmatpush3.msra.mxu1 %v401_v1 }
 0x26e   :  { %659 = vmatmul.mubr.msk.f32.vlgmr.msra.gmra.mxu1 %vm299_vm3, %v405_v2  ;;  %661 = vmatprep.subr.mxu1 %v674_v48 }
 0x26f   :  { %663 = vmatprep.mubr.msk.f32.mxu1 %vm675_vm5, %v674_v48 }
 0x32e   :  { %v484_v4 = vpop.f32.mrf.mxu1 }
 0x32f   :  { %v485_v5 = vadd.f32 %v484_v4, %v410_v3 }
 0x330   :  { %v660_v6 = vpop.f32.mrf.mxu1 }
 0x331   :  { %671 = vtanh.f32 %v485_v5 }
 0x33e   :  { %v672_v8 = vpop.eup %671 }
 0x33f   :  { %662 = vmatpush3.msk.msra.mxu1 %vm500_vm6, %v672_v8 }
 0x340   :  { %664 = vmatmul.mubr.msk.f32.vlgmr.msra.gmra.mxu1 %vm496_vm7, %v489_v7 }
 0x400   :  { %v570_v10 = vpop.f32.mrf.mxu1 }
 0x401   :  { %v571_v11 = vadd.f32 %v570_v10, %v494_v9 }
 0x402   :  { %v665_v12 = vpop.f32.mrf.mxu1 }
 0x403   :  { %v574_v13 = vadd.f32 %v571_v11, %v739_v0 }
 0x405   :  { %576 = vst.msk [vmem:[%s844_s11] sm:$0xff] %vm575_vm8, %v574_v13 }

</bundles_post_ra>
